<compile_context>
chip_gen: v6e
topology: v6e:2x2x1
jax: 0.10.0
libtpu: 0.0.40
codegen_flags: <defaults>
</compile_context>

<pallas_src>
import math

import jax
import jax.numpy as jnp
from jax.experimental import pallas as pl
from jax.experimental.pallas import tpu as pltpu

# ------------------------- small BERT config -------------------------
VOCAB = 99
HIDDEN = 32
N_HEADS = 4
HEAD_DIM = HIDDEN // N_HEADS
INTERMEDIATE = 64
N_LAYERS = 2
MAX_POS = 16
TYPE_VOCAB = 2
LN_EPS = 1e-12

BATCH = 2
SEQ = 8            # stands in for max_length=512 padding of the real module
TOKENS = BATCH * SEQ

_ATTN_SCALE = 1.0 / math.sqrt(HEAD_DIM)
_INV_SQRT2 = 1.0 / math.sqrt(2.0)


# ------------------------- fused encoder kernel -------------------------
def _layernorm(h, g, b):
    """LayerNorm over the hidden (last) axis, f32 statistics."""
    mean = jnp.mean(h, axis=-1, keepdims=True)
    var = jnp.mean((h - mean) * (h - mean), axis=-1, keepdims=True)
    return (h - mean) * jax.lax.rsqrt(var + LN_EPS) * g + b


def _encoder_kernel(x_emb_ref, emb_g_ref, emb_b_ref,
                    wqkv_ref, bqkv_ref, wo_ref, bo_ref, ln1_g_ref, ln1_b_ref,
                    w1_ref, b1_ref, w2_ref, b2_ref, ln2_g_ref, ln2_b_ref,
                    out_ref, x_sc):
    """One grid step = (one batch tile, one BERT layer).  x_sc = f32 residual."""
    layer = pl.program_id(1)

    # First layer step of each batch tile also performs the embedding LayerNorm
    # (word + position + token_type already summed in JAX).
    @pl.when(layer == 0)
    def _():
        x_sc[...] = _layernorm(x_emb_ref[...].astype(jnp.float32),
                               emb_g_ref[...], emb_b_ref[...])

    x = x_sc[...]                                            # f32 [S, H]

    # ---- fused QKV projection: one [H, 3H] bf16 matmul, f32 accumulate ----
    qkv = jnp.dot(x.astype(jnp.bfloat16), wqkv_ref[...],
                  preferred_element_type=jnp.float32) + bqkv_ref[...]   # [S, 3H]

    # Softmax scale folded into Q once; single bf16 cast per Q/K/V block.
    q_all = (qkv[:, :HIDDEN] * _ATTN_SCALE).astype(jnp.bfloat16)        # [S, H]
    k_all = qkv[:, HIDDEN:2 * HIDDEN].astype(jnp.bfloat16)              # [S, H]
    v_all = qkv[:, 2 * HIDDEN:].astype(jnp.bfloat16)                    # [S, H]

    # ---- multi-head attention; Wo projection hoisted out of the head loop ----
    # TODO(synk): at real scale (16 heads, seq 512) switch the Python head loop
    # to a head-major batched formulation with a flash-style KV tiling; at these
    # toy dims a 4-way unroll keeps the lowering simple and vreg pressure tiny.
    ctx_heads = []
    for h in range(N_HEADS):
        c0 = h * HEAD_DIM
        q = q_all[:, c0:c0 + HEAD_DIM]
        k = k_all[:, c0:c0 + HEAD_DIM]
        v = v_all[:, c0:c0 + HEAD_DIM]
        s = jax.lax.dot_general(q, k, (((1,), (1,)), ((), ())),
                                preferred_element_type=jnp.float32)     # [S, S]
        s = s - jnp.max(s, axis=-1, keepdims=True)
        p = jnp.exp(s)
        p = p / jnp.sum(p, axis=-1, keepdims=True)                      # exact softmax
        ctx_heads.append(jnp.dot(p.astype(jnp.bfloat16), v,
                                 preferred_element_type=jnp.float32))   # [S, dh]
    ctx = jnp.concatenate(ctx_heads, axis=-1)                           # [S, H]

    # Single output projection (one K=HIDDEN matmul instead of N_HEADS K=dh ones).
    attn_out = jnp.dot(ctx.astype(jnp.bfloat16), wo_ref[...],
                       preferred_element_type=jnp.float32) + bo_ref[...]

    # residual + LayerNorm (attention block)
    x = _layernorm(x + attn_out, ln1_g_ref[...], ln1_b_ref[...])

    # ---- FFN: dense -> exact erf-GELU -> dense, residual + LayerNorm ----
    h1 = jnp.dot(x.astype(jnp.bfloat16), w1_ref[...],
                 preferred_element_type=jnp.float32) + b1_ref[...]      # [S, I]
    h1 = 0.5 * h1 * (1.0 + jax.lax.erf(h1 * _INV_SQRT2))                # exact GELU
    h2 = jnp.dot(h1.astype(jnp.bfloat16), w2_ref[...],
                 preferred_element_type=jnp.float32) + b2_ref[...]      # [S, H]
    x = _layernorm(x + h2, ln2_g_ref[...], ln2_b_ref[...])

    x_sc[...] = x                                            # carry to next layer

    # Output block is resident across the layer axis: only flush once.
    @pl.when(layer == pl.num_programs(1) - 1)
    def _():
        out_ref[...] = x.astype(out_ref.dtype)


# ------------------------- BlockSpec helpers -------------------------
def _layer_spec(*dims):
    """Per-layer stacked parameter: leading layer dim squeezed, indexed by layer."""
    zeros = (0,) * len(dims)
    return pl.BlockSpec((None,) + dims, lambda b, l, _z=zeros: (l,) + _z)


def _const_spec(*dims):
    """Grid-independent input: same block every step (stays VMEM-resident)."""
    zeros = (0,) * len(dims)
    return pl.BlockSpec(dims, lambda b, l, _z=zeros: _z)


def _batch_spec(*dims):
    """Per-batch-tile activation block: indexed by the parallel batch axis."""
    zeros = (0,) * (len(dims) - 1)
    return pl.BlockSpec(dims, lambda b, l, _z=zeros: (b,) + _z)


# ------------------------- deterministic parameters -------------------------
def init_params(key):
    def w(k, shape, dtype=jnp.bfloat16, scale=0.02):
        return (scale * jax.random.normal(k, shape, jnp.float32)).astype(dtype)

    keys = iter(jax.random.split(key, 16))
    return {
        # embeddings kept f32 (gather + LN input precision)
        "word_emb": w(next(keys), (VOCAB, HIDDEN), jnp.float32),
        "pos_emb": w(next(keys), (MAX_POS, HIDDEN), jnp.float32),
        "type_emb": w(next(keys), (TYPE_VOCAB, HIDDEN), jnp.float32),
        "emb_ln_g": jnp.ones((1, HIDDEN), jnp.float32),
        "emb_ln_b": jnp.zeros((1, HIDDEN), jnp.float32),
        # stacked per-layer weights: bf16 MXU operands, f32 biases / LN params
        "wqkv": w(next(keys), (N_LAYERS, HIDDEN, 3 * HIDDEN)),   # Wq|Wk|Wv fused
        "bqkv": jnp.zeros((N_LAYERS, 1, 3 * HIDDEN), jnp.float32),
        "wo":   w(next(keys), (N_LAYERS, HIDDEN, HIDDEN)),
        "bo":   jnp.zeros((N_LAYERS, 1, HIDDEN), jnp.float32),
        "ln1_g": jnp.ones((N_LAYERS, 1, HIDDEN), jnp.float32),
        "ln1_b": jnp.zeros((N_LAYERS, 1, HIDDEN), jnp.float32),
        "w1":   w(next(keys), (N_LAYERS, HIDDEN, INTERMEDIATE)),
        "b1":   jnp.zeros((N_LAYERS, 1, INTERMEDIATE), jnp.float32),
        "w2":   w(next(keys), (N_LAYERS, INTERMEDIATE, HIDDEN)),
        "b2":   jnp.zeros((N_LAYERS, 1, HIDDEN), jnp.float32),
        "ln2_g": jnp.ones((N_LAYERS, 1, HIDDEN), jnp.float32),
        "ln2_b": jnp.zeros((N_LAYERS, 1, HIDDEN), jnp.float32),
    }


# ------------------------- cost estimate -------------------------
def _cost_estimate():
    flops_per_step = (2 * SEQ * HIDDEN * 3 * HIDDEN            # QKV
                      + 2 * N_HEADS * SEQ * SEQ * HEAD_DIM     # scores
                      + 2 * N_HEADS * SEQ * SEQ * HEAD_DIM     # P @ V
                      + 2 * SEQ * HIDDEN * HIDDEN              # Wo
                      + 2 * SEQ * HIDDEN * INTERMEDIATE        # FFN up
                      + 2 * SEQ * INTERMEDIATE * HIDDEN)       # FFN down
    trans_per_step = N_HEADS * SEQ * SEQ + SEQ * INTERMEDIATE  # exp + erf
    weight_bytes_per_layer = (
        2 * (HIDDEN * 3 * HIDDEN + HIDDEN * HIDDEN
             + HIDDEN * INTERMEDIATE + INTERMEDIATE * HIDDEN)          # bf16 mats
        + 4 * (3 * HIDDEN + HIDDEN + INTERMEDIATE + HIDDEN + 4 * HIDDEN))  # f32 vecs
    steps = BATCH * N_LAYERS
    bytes_accessed = (steps * weight_bytes_per_layer
                      + 2 * 4 * TOKENS * HIDDEN)               # x_emb in + out
    return pl.CostEstimate(flops=steps * flops_per_step,
                           transcendentals=steps * trans_per_step,
                           bytes_accessed=bytes_accessed)


# ------------------------- BERT encoder forward -------------------------
def taiyi_clip_embed(params, input_ids):
    """Equivalent of TaiyiCLIPEmbedder.forward starting from token ids.

    input_ids: int32 [B, S] -> last_hidden_state float32 [B, S, HIDDEN].
    The original module calls BertModel without attention_mask (HF defaults to
    all-ones), so no padding mask is applied; token_type_ids default to zeros;
    dropout is eval (identity).
    """
    B, S = input_ids.shape
    assert (B, S) == (BATCH, SEQ)
    T = B * S

    # Embedding gathers are glue (plain JAX); everything downstream is one kernel.
    word = params["word_emb"][input_ids]                                   # [B, S, H]
    pos_type = params["pos_emb"][:S] + params["type_emb"][0][None, :]      # [S, H]
    x_emb = (word + pos_type[None]).reshape(T, HIDDEN)                     # f32 [T, H]

    grid_spec = pltpu.PrefetchScalarGridSpec(
        num_scalar_prefetch=0,
        # batch tiles are independent ("parallel", feeds both TCs on v7x);
        # the layer axis is the sequential residual carry ("arbitrary").
        grid=(B, N_LAYERS),
        in_specs=[
            _batch_spec(SEQ, HIDDEN),                 # x_emb tile (used at l==0)
            _const_spec(1, HIDDEN),                   # emb_ln_g
            _const_spec(1, HIDDEN),                   # emb_ln_b
            _layer_spec(HIDDEN, 3 * HIDDEN),          # wqkv
            _layer_spec(1, 3 * HIDDEN),               # bqkv
            _layer_spec(HIDDEN, HIDDEN),              # wo
            _layer_spec(1, HIDDEN),                   # bo
            _layer_spec(1, HIDDEN),                   # ln1_g
            _layer_spec(1, HIDDEN),                   # ln1_b
            _layer_spec(HIDDEN, INTERMEDIATE),        # w1
            _layer_spec(1, INTERMEDIATE),             # b1
            _layer_spec(INTERMEDIATE, HIDDEN),        # w2
            _layer_spec(1, HIDDEN),                   # b2
            _layer_spec(1, HIDDEN),                   # ln2_g
            _layer_spec(1, HIDDEN),                   # ln2_b
        ],
        out_specs=_batch_spec(SEQ, HIDDEN),
        scratch_shapes=[
            pltpu.VMEM((SEQ, HIDDEN), jnp.float32),   # f32 residual stream
        ],
    )

    out = pl.pallas_call(
        _encoder_kernel,
        out_shape=jax.ShapeDtypeStruct((T, HIDDEN), jnp.float32),
        grid_spec=grid_spec,
        cost_estimate=_cost_estimate(),
        compiler_params=pltpu.CompilerParams(
            dimension_semantics=("parallel", "arbitrary"),
            # safe everywhere (<= physical on v5e/v6e/v7x); at real BERT-large
            # scale the layer-resident weights need this headroom explicitly.
            vmem_limit_bytes=32 * 1024 * 1024),
    )(x_emb,
      params["emb_ln_g"], params["emb_ln_b"],
      params["wqkv"], params["bqkv"], params["wo"], params["bo"],
      params["ln1_g"], params["ln1_b"],
      params["w1"], params["b1"], params["w2"], params["b2"],
      params["ln2_g"], params["ln2_b"])

    return out.reshape(B, S, HIDDEN)                  # last_hidden_state


if __name__ == "__main__":
    key = jax.random.PRNGKey(0)
    pkey, tkey = jax.random.split(key)
    params = init_params(pkey)

    # TODO(synk): BertTokenizer (string -> padded ids) is host-side string processing
    # with no Pallas equivalent; deterministic synthetic token ids stand in for it.
    input_ids = jax.random.randint(tkey, (BATCH, SEQ), 0, VOCAB, dtype=jnp.int32)

    z = jax.jit(taiyi_clip_embed)(params, input_ids)
    z = jax.block_until_ready(z)
    assert z.shape == (BATCH, SEQ, HIDDEN) and z.dtype == jnp.float32
    print("KERNEL_OK")
</pallas_src>

<mosaic_0001>
module attributes {stable_mosaic.version = 11 : i64} {
  func.func @_encoder_kernel(%arg0: i32, %arg1: i32, %arg2: memref<8x32xf32, #tpu.memory_space<vmem>>, %arg3: memref<1x32xf32, #tpu.memory_space<vmem>>, %arg4: memref<1x32xf32, #tpu.memory_space<vmem>>, %arg5: memref<1x32x96xbf16, #tpu.memory_space<vmem>>, %arg6: memref<1x1x96xf32, #tpu.memory_space<vmem>>, %arg7: memref<1x32x32xbf16, #tpu.memory_space<vmem>>, %arg8: memref<1x1x32xf32, #tpu.memory_space<vmem>>, %arg9: memref<1x1x32xf32, #tpu.memory_space<vmem>>, %arg10: memref<1x1x32xf32, #tpu.memory_space<vmem>>, %arg11: memref<1x32x64xbf16, #tpu.memory_space<vmem>>, %arg12: memref<1x1x64xf32, #tpu.memory_space<vmem>>, %arg13: memref<1x64x32xbf16, #tpu.memory_space<vmem>>, %arg14: memref<1x1x32xf32, #tpu.memory_space<vmem>>, %arg15: memref<1x1x32xf32, #tpu.memory_space<vmem>>, %arg16: memref<1x1x32xf32, #tpu.memory_space<vmem>>, %arg17: memref<8x32xf32, #tpu.memory_space<vmem>>, %arg18: memref<8x32xf32, #tpu.memory_space<vmem>>) attributes {dimension_semantics = [#tpu.dimension_semantics<parallel>, #tpu.dimension_semantics<arbitrary>], iteration_bounds = array<i64: 2, 2>, scalar_prefetch = 0 : i64, scratch_operands = 1 : i64, tpu.core_type = #tpu.core_type<tc>, window_params = [{transform_indices = @transform_0, window_bounds = array<i64: 8, 32>}, {pipeline_mode = #tpu.pipeline_mode<synchronous>, transform_indices = @transform_1, window_bounds = array<i64: 1, 32>}, {pipeline_mode = #tpu.pipeline_mode<synchronous>, transform_indices = @transform_2, window_bounds = array<i64: 1, 32>}, {transform_indices = @transform_3, window_bounds = array<i64: 1, 32, 96>}, {transform_indices = @transform_4, window_bounds = array<i64: 1, 1, 96>}, {transform_indices = @transform_5, window_bounds = array<i64: 1, 32, 32>}, {transform_indices = @transform_6, window_bounds = array<i64: 1, 1, 32>}, {transform_indices = @transform_7, window_bounds = array<i64: 1, 1, 32>}, {transform_indices = @transform_8, window_bounds = array<i64: 1, 1, 32>}, {transform_indices = @transform_9, window_bounds = array<i64: 1, 32, 64>}, {transform_indices = @transform_10, window_bounds = array<i64: 1, 1, 64>}, {transform_indices = @transform_11, window_bounds = array<i64: 1, 64, 32>}, {transform_indices = @transform_12, window_bounds = array<i64: 1, 1, 32>}, {transform_indices = @transform_13, window_bounds = array<i64: 1, 1, 32>}, {transform_indices = @transform_14, window_bounds = array<i64: 1, 1, 32>}, {transform_indices = @transform_15, window_bounds = array<i64: 8, 32>}]} {
    %c0_i32 = arith.constant 0 : i32
    %0 = arith.cmpi eq, %arg1, %c0_i32 : i32
    %1 = arith.extui %0 : i1 to i32
    %c0_i32_0 = arith.constant 0 : i32
    %2 = arith.cmpi ne, %1, %c0_i32_0 : i32
    scf.if %2 {
      %c0_74 = arith.constant 0 : index
      %c0_75 = arith.constant 0 : index
      %175 = vector.load %arg2[%c0_74, %c0_75] : memref<8x32xf32, #tpu.memory_space<vmem>>, vector<8x32xf32>
      %c0_76 = arith.constant 0 : index
      %c0_77 = arith.constant 0 : index
      %176 = vector.load %arg3[%c0_76, %c0_77] : memref<1x32xf32, #tpu.memory_space<vmem>>, vector<1x32xf32>
      %c0_78 = arith.constant 0 : index
      %c0_79 = arith.constant 0 : index
      %177 = vector.load %arg4[%c0_78, %c0_79] : memref<1x32xf32, #tpu.memory_space<vmem>>, vector<1x32xf32>
      %cst_80 = arith.constant dense<0.000000e+00> : vector<8xf32>
      %178 = vector.multi_reduction <add>, %175, %cst_80 [1] : vector<8x32xf32> to vector<8xf32>
      %179 = vector.shape_cast %178 : vector<8xf32> to vector<8x1xf32>
      %cst_81 = arith.constant 3.200000e+01 : f32
      %180 = vector.broadcast %cst_81 : f32 to vector<8x1xf32>
      %181 = arith.divf %179, %180 : vector<8x1xf32>
      %182 = vector.broadcast %181 : vector<8x1xf32> to vector<8x32xf32>
      %183 = arith.subf %175, %182 : vector<8x32xf32>
      %184 = vector.broadcast %181 : vector<8x1xf32> to vector<8x32xf32>
      %185 = arith.subf %175, %184 : vector<8x32xf32>
      %186 = arith.mulf %183, %185 : vector<8x32xf32>
      %cst_82 = arith.constant dense<0.000000e+00> : vector<8xf32>
      %187 = vector.multi_reduction <add>, %186, %cst_82 [1] : vector<8x32xf32> to vector<8xf32>
      %188 = vector.shape_cast %187 : vector<8xf32> to vector<8x1xf32>
      %cst_83 = arith.constant 3.200000e+01 : f32
      %189 = vector.broadcast %cst_83 : f32 to vector<8x1xf32>
      %190 = arith.divf %188, %189 : vector<8x1xf32>
      %191 = vector.broadcast %181 : vector<8x1xf32> to vector<8x32xf32>
      %192 = arith.subf %175, %191 : vector<8x32xf32>
      %cst_84 = arith.constant 9.99999996E-13 : f32
      %193 = vector.broadcast %cst_84 : f32 to vector<8x1xf32>
      %194 = arith.addf %190, %193 : vector<8x1xf32>
      %195 = math.rsqrt %194 : vector<8x1xf32>
      %196 = vector.broadcast %195 : vector<8x1xf32> to vector<8x32xf32>
      %197 = arith.mulf %192, %196 : vector<8x32xf32>
      %198 = vector.broadcast %176 : vector<1x32xf32> to vector<8x32xf32>
      %199 = arith.mulf %197, %198 : vector<8x32xf32>
      %200 = vector.broadcast %177 : vector<1x32xf32> to vector<8x32xf32>
      %201 = arith.addf %199, %200 : vector<8x32xf32>
      %c0_85 = arith.constant 0 : index
      %c0_86 = arith.constant 0 : index
      %202 = vector.load %arg18[%c0_85, %c0_86] : memref<8x32xf32, #tpu.memory_space<vmem>>, vector<8x32xf32>
      tpu.vector_store %arg18[%c0_85, %c0_86], %201 {strides = array<i32>} : memref<8x32xf32, #tpu.memory_space<vmem>>, vector<8x32xf32>,
    } else {
    }
    %c0 = arith.constant 0 : index
    %c0_1 = arith.constant 0 : index
    %3 = vector.load %arg18[%c0, %c0_1] : memref<8x32xf32, #tpu.memory_space<vmem>>, vector<8x32xf32>
    %4 = arith.truncf %3 : vector<8x32xf32> to vector<8x32xbf16>
    %c0_2 = arith.constant 0 : index
    %c0_3 = arith.constant 0 : index
    %c0_4 = arith.constant 0 : index
    %5 = vector.load %arg5[%c0_2, %c0_3, %c0_4] : memref<1x32x96xbf16, #tpu.memory_space<vmem>>, vector<1x32x96xbf16>
    %6 = vector.shape_cast %5 : vector<1x32x96xbf16> to vector<32x96xbf16>
    %cst = arith.constant dense<0.000000e+00> : vector<8x96xf32>
    %7 = tpu.matmul %4, %6, %cst {dimension_numbers = #tpu.dot_dimension_numbers<[1], [0], [0], [1], [0, 0, 1, 1], [], []>} : vector<8x32xbf16>, vector<32x96xbf16>, vector<8x96xf32> -> vector<8x96xf32>
    %c0_5 = arith.constant 0 : index
    %c0_6 = arith.constant 0 : index
    %c0_7 = arith.constant 0 : index
    %8 = vector.load %arg6[%c0_5, %c0_6, %c0_7] : memref<1x1x96xf32, #tpu.memory_space<vmem>>, vector<1x1x96xf32>
    %9 = vector.shape_cast %8 : vector<1x1x96xf32> to vector<1x96xf32>
    %10 = vector.broadcast %9 : vector<1x96xf32> to vector<8x96xf32>
    %11 = arith.addf %7, %10 : vector<8x96xf32>
    %12 = vector.extract_strided_slice %11 {offsets = [0, 0], sizes = [8, 32], strides = [1, 1]} : vector<8x96xf32> to vector<8x32xf32>
    %cst_8 = arith.constant 0.353553385 : f32
    %13 = vector.broadcast %cst_8 : f32 to vector<8x32xf32>
    %14 = arith.mulf %12, %13 : vector<8x32xf32>
    %15 = arith.truncf %14 : vector<8x32xf32> to vector<8x32xbf16>
    %16 = vector.extract_strided_slice %11 {offsets = [0, 32], sizes = [8, 32], strides = [1, 1]} : vector<8x96xf32> to vector<8x32xf32>
    %17 = arith.truncf %16 : vector<8x32xf32> to vector<8x32xbf16>
    %18 = vector.extract_strided_slice %11 {offsets = [0, 64], sizes = [8, 32], strides = [1, 1]} : vector<8x96xf32> to vector<8x32xf32>
    %19 = arith.truncf %18 : vector<8x32xf32> to vector<8x32xbf16>
    %20 = vector.extract_strided_slice %15 {offsets = [0, 0], sizes = [8, 8], strides = [1, 1]} : vector<8x32xbf16> to vector<8x8xbf16>
    %21 = vector.extract_strided_slice %17 {offsets = [0, 0], sizes = [8, 8], strides = [1, 1]} : vector<8x32xbf16> to vector<8x8xbf16>
    %22 = vector.extract_strided_slice %19 {offsets = [0, 0], sizes = [8, 8], strides = [1, 1]} : vector<8x32xbf16> to vector<8x8xbf16>
    %cst_9 = arith.constant dense<0.000000e+00> : vector<8x8xf32>
    %23 = tpu.matmul %20, %21, %cst_9 {dimension_numbers = #tpu.dot_dimension_numbers<[1], [1], [0], [0], [0, 0, 1, 0], [], []>} : vector<8x8xbf16>, vector<8x8xbf16>, vector<8x8xf32> -> vector<8x8xf32>
    %cst_10 = arith.constant dense<0xFF800000> : vector<8xf32>
    %24 = vector.multi_reduction <maximumf>, %23, %cst_10 [1] : vector<8x8xf32> to vector<8xf32>
    %25 = vector.shape_cast %24 : vector<8xf32> to vector<8x1xf32>
    %26 = vector.broadcast %25 : vector<8x1xf32> to vector<8x8xf32>
    %27 = arith.subf %23, %26 : vector<8x8xf32>
    %28 = math.exp %27 : vector<8x8xf32>
    %cst_11 = arith.constant dense<0.000000e+00> : vector<8xf32>
    %29 = vector.multi_reduction <add>, %28, %cst_11 [1] : vector<8x8xf32> to vector<8xf32>
    %30 = vector.shape_cast %29 : vector<8xf32> to vector<8x1xf32>
    %31 = vector.broadcast %30 : vector<8x1xf32> to vector<8x8xf32>
    %32 = arith.divf %28, %31 : vector<8x8xf32>
    %33 = arith.truncf %32 : vector<8x8xf32> to vector<8x8xbf16>
    %cst_12 = arith.constant dense<0.000000e+00> : vector<8x8xf32>
    %34 = tpu.matmul %33, %22, %cst_12 {dimension_numbers = #tpu.dot_dimension_numbers<[1], [0], [0], [1], [0, 0, 1, 1], [], []>} : vector<8x8xbf16>, vector<8x8xbf16>, vector<8x8xf32> -> vector<8x8xf32>
    %35 = vector.extract_strided_slice %15 {offsets = [0, 8], sizes = [8, 8], strides = [1, 1]} : vector<8x32xbf16> to vector<8x8xbf16>
    %36 = vector.extract_strided_slice %17 {offsets = [0, 8], sizes = [8, 8], strides = [1, 1]} : vector<8x32xbf16> to vector<8x8xbf16>
    %37 = vector.extract_strided_slice %19 {offsets = [0, 8], sizes = [8, 8], strides = [1, 1]} : vector<8x32xbf16> to vector<8x8xbf16>
    %cst_13 = arith.constant dense<0.000000e+00> : vector<8x8xf32>
    %38 = tpu.matmul %35, %36, %cst_13 {dimension_numbers = #tpu.dot_dimension_numbers<[1], [1], [0], [0], [0, 0, 1, 0], [], []>} : vector<8x8xbf16>, vector<8x8xbf16>, vector<8x8xf32> -> vector<8x8xf32>
    %cst_14 = arith.constant dense<0xFF800000> : vector<8xf32>
    %39 = vector.multi_reduction <maximumf>, %38, %cst_14 [1] : vector<8x8xf32> to vector<8xf32>
    %40 = vector.shape_cast %39 : vector<8xf32> to vector<8x1xf32>
    %41 = vector.broadcast %40 : vector<8x1xf32> to vector<8x8xf32>
    %42 = arith.subf %38, %41 : vector<8x8xf32>
    %43 = math.exp %42 : vector<8x8xf32>
    %cst_15 = arith.constant dense<0.000000e+00> : vector<8xf32>
    %44 = vector.multi_reduction <add>, %43, %cst_15 [1] : vector<8x8xf32> to vector<8xf32>
    %45 = vector.shape_cast %44 : vector<8xf32> to vector<8x1xf32>
    %46 = vector.broadcast %45 : vector<8x1xf32> to vector<8x8xf32>
    %47 = arith.divf %43, %46 : vector<8x8xf32>
    %48 = arith.truncf %47 : vector<8x8xf32> to vector<8x8xbf16>
    %cst_16 = arith.constant dense<0.000000e+00> : vector<8x8xf32>
    %49 = tpu.matmul %48, %37, %cst_16 {dimension_numbers = #tpu.dot_dimension_numbers<[1], [0], [0], [1], [0, 0, 1, 1], [], []>} : vector<8x8xbf16>, vector<8x8xbf16>, vector<8x8xf32> -> vector<8x8xf32>
    %50 = vector.extract_strided_slice %15 {offsets = [0, 16], sizes = [8, 8], strides = [1, 1]} : vector<8x32xbf16> to vector<8x8xbf16>
    %51 = vector.extract_strided_slice %17 {offsets = [0, 16], sizes = [8, 8], strides = [1, 1]} : vector<8x32xbf16> to vector<8x8xbf16>
    %52 = vector.extract_strided_slice %19 {offsets = [0, 16], sizes = [8, 8], strides = [1, 1]} : vector<8x32xbf16> to vector<8x8xbf16>
    %cst_17 = arith.constant dense<0.000000e+00> : vector<8x8xf32>
    %53 = tpu.matmul %50, %51, %cst_17 {dimension_numbers = #tpu.dot_dimension_numbers<[1], [1], [0], [0], [0, 0, 1, 0], [], []>} : vector<8x8xbf16>, vector<8x8xbf16>, vector<8x8xf32> -> vector<8x8xf32>
    %cst_18 = arith.constant dense<0xFF800000> : vector<8xf32>
    %54 = vector.multi_reduction <maximumf>, %53, %cst_18 [1] : vector<8x8xf32> to vector<8xf32>
    %55 = vector.shape_cast %54 : vector<8xf32> to vector<8x1xf32>
    %56 = vector.broadcast %55 : vector<8x1xf32> to vector<8x8xf32>
    %57 = arith.subf %53, %56 : vector<8x8xf32>
    %58 = math.exp %57 : vector<8x8xf32>
    %cst_19 = arith.constant dense<0.000000e+00> : vector<8xf32>
    %59 = vector.multi_reduction <add>, %58, %cst_19 [1] : vector<8x8xf32> to vector<8xf32>
    %60 = vector.shape_cast %59 : vector<8xf32> to vector<8x1xf32>
    %61 = vector.broadcast %60 : vector<8x1xf32> to vector<8x8xf32>
    %62 = arith.divf %58, %61 : vector<8x8xf32>
    %63 = arith.truncf %62 : vector<8x8xf32> to vector<8x8xbf16>
    %cst_20 = arith.constant dense<0.000000e+00> : vector<8x8xf32>
    %64 = tpu.matmul %63, %52, %cst_20 {dimension_numbers = #tpu.dot_dimension_numbers<[1], [0], [0], [1], [0, 0, 1, 1], [], []>} : vector<8x8xbf16>, vector<8x8xbf16>, vector<8x8xf32> -> vector<8x8xf32>
    %65 = vector.extract_strided_slice %15 {offsets = [0, 24], sizes = [8, 8], strides = [1, 1]} : vector<8x32xbf16> to vector<8x8xbf16>
    %66 = vector.extract_strided_slice %17 {offsets = [0, 24], sizes = [8, 8], strides = [1, 1]} : vector<8x32xbf16> to vector<8x8xbf16>
    %67 = vector.extract_strided_slice %19 {offsets = [0, 24], sizes = [8, 8], strides = [1, 1]} : vector<8x32xbf16> to vector<8x8xbf16>
    %cst_21 = arith.constant dense<0.000000e+00> : vector<8x8xf32>
    %68 = tpu.matmul %65, %66, %cst_21 {dimension_numbers = #tpu.dot_dimension_numbers<[1], [1], [0], [0], [0, 0, 1, 0], [], []>} : vector<8x8xbf16>, vector<8x8xbf16>, vector<8x8xf32> -> vector<8x8xf32>
    %cst_22 = arith.constant dense<0xFF800000> : vector<8xf32>
    %69 = vector.multi_reduction <maximumf>, %68, %cst_22 [1] : vector<8x8xf32> to vector<8xf32>
    %70 = vector.shape_cast %69 : vector<8xf32> to vector<8x1xf32>
    %71 = vector.broadcast %70 : vector<8x1xf32> to vector<8x8xf32>
    %72 = arith.subf %68, %71 : vector<8x8xf32>
    %73 = math.exp %72 : vector<8x8xf32>
    %cst_23 = arith.constant dense<0.000000e+00> : vector<8xf32>
    %74 = vector.multi_reduction <add>, %73, %cst_23 [1] : vector<8x8xf32> to vector<8xf32>
    %75 = vector.shape_cast %74 : vector<8xf32> to vector<8x1xf32>
    %76 = vector.broadcast %75 : vector<8x1xf32> to vector<8x8xf32>
    %77 = arith.divf %73, %76 : vector<8x8xf32>
    %78 = arith.truncf %77 : vector<8x8xf32> to vector<8x8xbf16>
    %cst_24 = arith.constant dense<0.000000e+00> : vector<8x8xf32>
    %79 = tpu.matmul %78, %67, %cst_24 {dimension_numbers = #tpu.dot_dimension_numbers<[1], [0], [0], [1], [0, 0, 1, 1], [], []>} : vector<8x8xbf16>, vector<8x8xbf16>, vector<8x8xf32> -> vector<8x8xf32>
    %80 = tpu.concatenate %34, %49, %64, %79 in 1 : vector<8x8xf32>, vector<8x8xf32>, vector<8x8xf32>, vector<8x8xf32> -> vector<8x32xf32>
    %81 = arith.truncf %80 : vector<8x32xf32> to vector<8x32xbf16>
    %c0_25 = arith.constant 0 : index
    %c0_26 = arith.constant 0 : index
    %c0_27 = arith.constant 0 : index
    %82 = vector.load %arg7[%c0_25, %c0_26, %c0_27] : memref<1x32x32xbf16, #tpu.memory_space<vmem>>, vector<1x32x32xbf16>
    %83 = vector.shape_cast %82 : vector<1x32x32xbf16> to vector<32x32xbf16>
    %cst_28 = arith.constant dense<0.000000e+00> : vector<8x32xf32>
    %84 = tpu.matmul %81, %83, %cst_28 {dimension_numbers = #tpu.dot_dimension_numbers<[1], [0], [0], [1], [0, 0, 1, 1], [], []>} : vector<8x32xbf16>, vector<32x32xbf16>, vector<8x32xf32> -> vector<8x32xf32>
    %c0_29 = arith.constant 0 : index
    %c0_30 = arith.constant 0 : index
    %c0_31 = arith.constant 0 : index
    %85 = vector.load %arg8[%c0_29, %c0_30, %c0_31] : memref<1x1x32xf32, #tpu.memory_space<vmem>>, vector<1x1x32xf32>
    %86 = vector.shape_cast %85 : vector<1x1x32xf32> to vector<1x32xf32>
    %87 = vector.broadcast %86 : vector<1x32xf32> to vector<8x32xf32>
    %88 = arith.addf %84, %87 : vector<8x32xf32>
    %89 = arith.addf %3, %88 : vector<8x32xf32>
    %c0_32 = arith.constant 0 : index
    %c0_33 = arith.constant 0 : index
    %c0_34 = arith.constant 0 : index
    %90 = vector.load %arg9[%c0_32, %c0_33, %c0_34] : memref<1x1x32xf32, #tpu.memory_space<vmem>>, vector<1x1x32xf32>
    %91 = vector.shape_cast %90 : vector<1x1x32xf32> to vector<1x32xf32>
    %c0_35 = arith.constant 0 : index
    %c0_36 = arith.constant 0 : index
    %c0_37 = arith.constant 0 : index
    %92 = vector.load %arg10[%c0_35, %c0_36, %c0_37] : memref<1x1x32xf32, #tpu.memory_space<vmem>>, vector<1x1x32xf32>
    %93 = vector.shape_cast %92 : vector<1x1x32xf32> to vector<1x32xf32>
    %cst_38 = arith.constant dense<0.000000e+00> : vector<8xf32>
    %94 = vector.multi_reduction <add>, %89, %cst_38 [1] : vector<8x32xf32> to vector<8xf32>
    %95 = vector.shape_cast %94 : vector<8xf32> to vector<8x1xf32>
    %cst_39 = arith.constant 3.200000e+01 : f32
    %96 = vector.broadcast %cst_39 : f32 to vector<8x1xf32>
    %97 = arith.divf %95, %96 : vector<8x1xf32>
    %98 = vector.broadcast %97 : vector<8x1xf32> to vector<8x32xf32>
    %99 = arith.subf %89, %98 : vector<8x32xf32>
    %100 = vector.broadcast %97 : vector<8x1xf32> to vector<8x32xf32>
    %101 = arith.subf %89, %100 : vector<8x32xf32>
    %102 = arith.mulf %99, %101 : vector<8x32xf32>
    %cst_40 = arith.constant dense<0.000000e+00> : vector<8xf32>
    %103 = vector.multi_reduction <add>, %102, %cst_40 [1] : vector<8x32xf32> to vector<8xf32>
    %104 = vector.shape_cast %103 : vector<8xf32> to vector<8x1xf32>
    %cst_41 = arith.constant 3.200000e+01 : f32
    %105 = vector.broadcast %cst_41 : f32 to vector<8x1xf32>
    %106 = arith.divf %104, %105 : vector<8x1xf32>
    %107 = vector.broadcast %97 : vector<8x1xf32> to vector<8x32xf32>
    %108 = arith.subf %89, %107 : vector<8x32xf32>
    %cst_42 = arith.constant 9.99999996E-13 : f32
    %109 = vector.broadcast %cst_42 : f32 to vector<8x1xf32>
    %110 = arith.addf %106, %109 : vector<8x1xf32>
    %111 = math.rsqrt %110 : vector<8x1xf32>
    %112 = vector.broadcast %111 : vector<8x1xf32> to vector<8x32xf32>
    %113 = arith.mulf %108, %112 : vector<8x32xf32>
    %114 = vector.broadcast %91 : vector<1x32xf32> to vector<8x32xf32>
    %115 = arith.mulf %113, %114 : vector<8x32xf32>
    %116 = vector.broadcast %93 : vector<1x32xf32> to vector<8x32xf32>
    %117 = arith.addf %115, %116 : vector<8x32xf32>
    %118 = arith.truncf %117 : vector<8x32xf32> to vector<8x32xbf16>
    %c0_43 = arith.constant 0 : index
    %c0_44 = arith.constant 0 : index
    %c0_45 = arith.constant 0 : index
    %119 = vector.load %arg11[%c0_43, %c0_44, %c0_45] : memref<1x32x64xbf16, #tpu.memory_space<vmem>>, vector<1x32x64xbf16>
    %120 = vector.shape_cast %119 : vector<1x32x64xbf16> to vector<32x64xbf16>
    %cst_46 = arith.constant dense<0.000000e+00> : vector<8x64xf32>
    %121 = tpu.matmul %118, %120, %cst_46 {dimension_numbers = #tpu.dot_dimension_numbers<[1], [0], [0], [1], [0, 0, 1, 1], [], []>} : vector<8x32xbf16>, vector<32x64xbf16>, vector<8x64xf32> -> vector<8x64xf32>
    %c0_47 = arith.constant 0 : index
    %c0_48 = arith.constant 0 : index
    %c0_49 = arith.constant 0 : index
    %122 = vector.load %arg12[%c0_47, %c0_48, %c0_49] : memref<1x1x64xf32, #tpu.memory_space<vmem>>, vector<1x1x64xf32>
    %123 = vector.shape_cast %122 : vector<1x1x64xf32> to vector<1x64xf32>
    %124 = vector.broadcast %123 : vector<1x64xf32> to vector<8x64xf32>
    %125 = arith.addf %121, %124 : vector<8x64xf32>
    %cst_50 = arith.constant 5.000000e-01 : f32
    %126 = vector.broadcast %cst_50 : f32 to vector<8x64xf32>
    %127 = arith.mulf %126, %125 : vector<8x64xf32>
    %cst_51 = arith.constant 0.707106769 : f32
    %128 = vector.broadcast %cst_51 : f32 to vector<8x64xf32>
    %129 = arith.mulf %125, %128 : vector<8x64xf32>
    %130 = math.erf %129 : vector<8x64xf32>
    %cst_52 = arith.constant 1.000000e+00 : f32
    %131 = vector.broadcast %cst_52 : f32 to vector<8x64xf32>
    %132 = arith.addf %131, %130 : vector<8x64xf32>
    %133 = arith.mulf %127, %132 : vector<8x64xf32>
    %134 = arith.truncf %133 : vector<8x64xf32> to vector<8x64xbf16>
    %c0_53 = arith.constant 0 : index
    %c0_54 = arith.constant 0 : index
    %c0_55 = arith.constant 0 : index
    %135 = vector.load %arg13[%c0_53, %c0_54, %c0_55] : memref<1x64x32xbf16, #tpu.memory_space<vmem>>, vector<1x64x32xbf16>
    %136 = vector.shape_cast %135 : vector<1x64x32xbf16> to vector<64x32xbf16>
    %cst_56 = arith.constant dense<0.000000e+00> : vector<8x32xf32>
    %137 = tpu.matmul %134, %136, %cst_56 {dimension_numbers = #tpu.dot_dimension_numbers<[1], [0], [0], [1], [0, 0, 1, 1], [], []>} : vector<8x64xbf16>, vector<64x32xbf16>, vector<8x32xf32> -> vector<8x32xf32>
    %c0_57 = arith.constant 0 : index
    %c0_58 = arith.constant 0 : index
    %c0_59 = arith.constant 0 : index
    %138 = vector.load %arg14[%c0_57, %c0_58, %c0_59] : memref<1x1x32xf32, #tpu.memory_space<vmem>>, vector<1x1x32xf32>
    %139 = vector.shape_cast %138 : vector<1x1x32xf32> to vector<1x32xf32>
    %140 = vector.broadcast %139 : vector<1x32xf32> to vector<8x32xf32>
    %141 = arith.addf %137, %140 : vector<8x32xf32>
    %142 = arith.addf %117, %141 : vector<8x32xf32>
    %c0_60 = arith.constant 0 : index
    %c0_61 = arith.constant 0 : index
    %c0_62 = arith.constant 0 : index
    %143 = vector.load %arg15[%c0_60, %c0_61, %c0_62] : memref<1x1x32xf32, #tpu.memory_space<vmem>>, vector<1x1x32xf32>
    %144 = vector.shape_cast %143 : vector<1x1x32xf32> to vector<1x32xf32>
    %c0_63 = arith.constant 0 : index
    %c0_64 = arith.constant 0 : index
    %c0_65 = arith.constant 0 : index
    %145 = vector.load %arg16[%c0_63, %c0_64, %c0_65] : memref<1x1x32xf32, #tpu.memory_space<vmem>>, vector<1x1x32xf32>
    %146 = vector.shape_cast %145 : vector<1x1x32xf32> to vector<1x32xf32>
    %cst_66 = arith.constant dense<0.000000e+00> : vector<8xf32>
    %147 = vector.multi_reduction <add>, %142, %cst_66 [1] : vector<8x32xf32> to vector<8xf32>
    %148 = vector.shape_cast %147 : vector<8xf32> to vector<8x1xf32>
    %cst_67 = arith.constant 3.200000e+01 : f32
    %149 = vector.broadcast %cst_67 : f32 to vector<8x1xf32>
    %150 = arith.divf %148, %149 : vector<8x1xf32>
    %151 = vector.broadcast %150 : vector<8x1xf32> to vector<8x32xf32>
    %152 = arith.subf %142, %151 : vector<8x32xf32>
    %153 = vector.broadcast %150 : vector<8x1xf32> to vector<8x32xf32>
    %154 = arith.subf %142, %153 : vector<8x32xf32>
    %155 = arith.mulf %152, %154 : vector<8x32xf32>
    %cst_68 = arith.constant dense<0.000000e+00> : vector<8xf32>
    %156 = vector.multi_reduction <add>, %155, %cst_68 [1] : vector<8x32xf32> to vector<8xf32>
    %157 = vector.shape_cast %156 : vector<8xf32> to vector<8x1xf32>
    %cst_69 = arith.constant 3.200000e+01 : f32
    %158 = vector.broadcast %cst_69 : f32 to vector<8x1xf32>
    %159 = arith.divf %157, %158 : vector<8x1xf32>
    %160 = vector.broadcast %150 : vector<8x1xf32> to vector<8x32xf32>
    %161 = arith.subf %142, %160 : vector<8x32xf32>
    %cst_70 = arith.constant 9.99999996E-13 : f32
    %162 = vector.broadcast %cst_70 : f32 to vector<8x1xf32>
    %163 = arith.addf %159, %162 : vector<8x1xf32>
    %164 = math.rsqrt %163 : vector<8x1xf32>
    %165 = vector.broadcast %164 : vector<8x1xf32> to vector<8x32xf32>
    %166 = arith.mulf %161, %165 : vector<8x32xf32>
    %167 = vector.broadcast %144 : vector<1x32xf32> to vector<8x32xf32>
    %168 = arith.mulf %166, %167 : vector<8x32xf32>
    %169 = vector.broadcast %146 : vector<1x32xf32> to vector<8x32xf32>
    %170 = arith.addf %168, %169 : vector<8x32xf32>
    %c0_71 = arith.constant 0 : index
    %c0_72 = arith.constant 0 : index
    %171 = vector.load %arg18[%c0_71, %c0_72] : memref<8x32xf32, #tpu.memory_space<vmem>>, vector<8x32xf32>
    tpu.vector_store %arg18[%c0_71, %c0_72], %170 {strides = array<i32>} : memref<8x32xf32, #tpu.memory_space<vmem>>, vector<8x32xf32>,
    %c1_i32 = arith.constant 1 : i32
    %172 = arith.cmpi eq, %arg1, %c1_i32 : i32
    %173 = arith.extui %172 : i1 to i32
    %c0_i32_73 = arith.constant 0 : i32
    %174 = arith.cmpi ne, %173, %c0_i32_73 : i32
    scf.if %174 {
      %c0_74 = arith.constant 0 : index
      %c0_75 = arith.constant 0 : index
      %175 = vector.load %arg17[%c0_74, %c0_75] : memref<8x32xf32, #tpu.memory_space<vmem>>, vector<8x32xf32>
      tpu.vector_store %arg17[%c0_74, %c0_75], %170 {strides = array<i32>} : memref<8x32xf32, #tpu.memory_space<vmem>>, vector<8x32xf32>,
    } else {
    }
    return
  }
  func.func @transform_0(%arg0: i32, %arg1: i32) -> (i32, i32) {
    %c0_i32 = arith.constant 0 : i32
    %c0_i32_0 = arith.constant 0 : i32
    return %arg0, %c0_i32 : i32, i32
  }
  func.func @transform_1(%arg0: i32, %arg1: i32) -> (i32, i32) {
    %c0_i32 = arith.constant 0 : i32
    %c0_i32_0 = arith.constant 0 : i32
    %c0_i32_1 = arith.constant 0 : i32
    return %c0_i32, %c0_i32_0 : i32, i32
  }
  func.func @transform_2(%arg0: i32, %arg1: i32) -> (i32, i32) {
    %c0_i32 = arith.constant 0 : i32
    %c0_i32_0 = arith.constant 0 : i32
    %c0_i32_1 = arith.constant 0 : i32
    return %c0_i32, %c0_i32_0 : i32, i32
  }
  func.func @transform_3(%arg0: i32, %arg1: i32) -> (i32, i32, i32) {
    %c0_i32 = arith.constant 0 : i32
    %c0_i32_0 = arith.constant 0 : i32
    %c0_i32_1 = arith.constant 0 : i32
    return %arg1, %c0_i32, %c0_i32_0 : i32, i32, i32
  }
  func.func @transform_4(%arg0: i32, %arg1: i32) -> (i32, i32, i32) {
    %c0_i32 = arith.constant 0 : i32
    %c0_i32_0 = arith.constant 0 : i32
    %c0_i32_1 = arith.constant 0 : i32
    return %arg1, %c0_i32, %c0_i32_0 : i32, i32, i32
  }
  func.func @transform_5(%arg0: i32, %arg1: i32) -> (i32, i32, i32) {
    %c0_i32 = arith.constant 0 : i32
    %c0_i32_0 = arith.constant 0 : i32
    %c0_i32_1 = arith.constant 0 : i32
    return %arg1, %c0_i32, %c0_i32_0 : i32, i32, i32
  }
  func.func @transform_6(%arg0: i32, %arg1: i32) -> (i32, i32, i32) {
    %c0_i32 = arith.constant 0 : i32
    %c0_i32_0 = arith.constant 0 : i32
    %c0_i32_1 = arith.constant 0 : i32
    return %arg1, %c0_i32, %c0_i32_0 : i32, i32, i32
  }
  func.func @transform_7(%arg0: i32, %arg1: i32) -> (i32, i32, i32) {
    %c0_i32 = arith.constant 0 : i32
    %c0_i32_0 = arith.constant 0 : i32
    %c0_i32_1 = arith.constant 0 : i32
    return %arg1, %c0_i32, %c0_i32_0 : i32, i32, i32
  }
  func.func @transform_8(%arg0: i32, %arg1: i32) -> (i32, i32, i32) {
    %c0_i32 = arith.constant 0 : i32
    %c0_i32_0 = arith.constant 0 : i32
    %c0_i32_1 = arith.constant 0 : i32
    return %arg1, %c0_i32, %c0_i32_0 : i32, i32, i32
  }
  func.func @transform_9(%arg0: i32, %arg1: i32) -> (i32, i32, i32) {
    %c0_i32 = arith.constant 0 : i32
    %c0_i32_0 = arith.constant 0 : i32
    %c0_i32_1 = arith.constant 0 : i32
    return %arg1, %c0_i32, %c0_i32_0 : i32, i32, i32
  }
  func.func @transform_10(%arg0: i32, %arg1: i32) -> (i32, i32, i32) {
    %c0_i32 = arith.constant 0 : i32
    %c0_i32_0 = arith.constant 0 : i32
    %c0_i32_1 = arith.constant 0 : i32
    return %arg1, %c0_i32, %c0_i32_0 : i32, i32, i32
  }
  func.func @transform_11(%arg0: i32, %arg1: i32) -> (i32, i32, i32) {
    %c0_i32 = arith.constant 0 : i32
    %c0_i32_0 = arith.constant 0 : i32
    %c0_i32_1 = arith.constant 0 : i32
    return %arg1, %c0_i32, %c0_i32_0 : i32, i32, i32
  }
  func.func @transform_12(%arg0: i32, %arg1: i32) -> (i32, i32, i32) {
    %c0_i32 = arith.constant 0 : i32
    %c0_i32_0 = arith.constant 0 : i32
    %c0_i32_1 = arith.constant 0 : i32
    return %arg1, %c0_i32, %c0_i32_0 : i32, i32, i32
  }
  func.func @transform_13(%arg0: i32, %arg1: i32) -> (i32, i32, i32) {
    %c0_i32 = arith.constant 0 : i32
    %c0_i32_0 = arith.constant 0 : i32
    %c0_i32_1 = arith.constant 0 : i32
    return %arg1, %c0_i32, %c0_i32_0 : i32, i32, i32
  }
  func.func @transform_14(%arg0: i32, %arg1: i32) -> (i32, i32, i32) {
    %c0_i32 = arith.constant 0 : i32
    %c0_i32_0 = arith.constant 0 : i32
    %c0_i32_1 = arith.constant 0 : i32
    return %arg1, %c0_i32, %c0_i32_0 : i32, i32, i32
  }
  func.func @transform_15(%arg0: i32, %arg1: i32) -> (i32, i32) {
    %c0_i32 = arith.constant 0 : i32
    %c0_i32_0 = arith.constant 0 : i32
    return %arg0, %c0_i32 : i32, i32
  }
}

</mosaic_0001>

<bundles_post_ra>
// kernel: taiyi_clip_embed.1
= control target key start
LH: loop header
LB: loop body
LE: loop exit
PB: predicated region body
PF: predicated region fallthrough
CT: control target
= control target key end

     0   :  { %s2580_s0 = inlined_call_operand.vmem [shape: f32[16,32], index: 0, kind: input, shape index: {}]   ;;  %s2581_s1 = inlined_call_operand.vmem [shape: f32[1,32], index: 1, kind: input, shape index: {}]   ;;  %s2582_s2 = inlined_call_operand.vmem [shape: f32[1,32], index: 2, kind: input, shape index: {}]   ;;  %s2583_s3 = inlined_call_operand.vmem [shape: bf16[2,32,96], index: 3, kind: input, shape index: {}]   ;;  %s2584_s4 = inlined_call_operand.vmem [shape: f32[2,1,96], index: 4, kind: input, shape index: {}]   ;;  %s2585_s5 = inlined_call_operand.vmem [shape: bf16[2,32,32], index: 5, kind: input, shape index: {}]   ;;  %s2586_s6 = inlined_call_operand.vmem [shape: f32[2,1,32], index: 6, kind: input, shape index: {}]   ;;  %s2587_s7 = inlined_call_operand.vmem [shape: f32[2,1,32], index: 7, kind: input, shape index: {}]   ;;  %s2588_s8 = inlined_call_operand.vmem [shape: f32[2,1,32], index: 8, kind: input, shape index: {}]   ;;  %s2589_s9 = inlined_call_operand.vmem [shape: bf16[2,32,64], index: 9, kind: input, shape index: {}]   ;;  %s2590_s10 = inlined_call_operand.vmem [shape: f32[2,1,64], index: 10, kind: input, shape index: {}]   ;;  %s2591_s11 = inlined_call_operand.vmem [shape: bf16[2,64,32], index: 11, kind: input, shape index: {}]   ;;  %s2592_s12 = inlined_call_operand.vmem [shape: f32[2,1,32], index: 12, kind: input, shape index: {}]   ;;  %s2593_s13 = inlined_call_operand.vmem [shape: f32[2,1,32], index: 13, kind: input, shape index: {}]   ;;  %s2594_s14 = inlined_call_operand.vmem [shape: f32[2,1,32], index: 14, kind: input, shape index: {}]   ;;  %s2595_s15 = inlined_call_operand.hbm [shape: f32[16,32], index: 15, kind: output, shape index: {}]  }
   0x1   :  { %2612 = sst [smem:[#allocation20_spill]] %s2580_s0 }
   0x2   :  { %2613 = sst [smem:[#allocation21_spill]] %s2581_s1 }
   0x3   :  { %2614 = sst [smem:[#allocation22_spill]] %s2582_s2 }
   0x4   :  { %2615 = sst [smem:[#allocation23_spill]] %s2583_s3 }
   0x5   :  { %2616 = sst [smem:[#allocation24_spill]] %s2585_s5 }
   0x6   :  { %2617 = sst [smem:[#allocation25_spill]] %s2595_s15 }
   0x7   :  { %20 = vsyncpa [#allocation4], 0 }
   0x8   :  { %22 = vsyncpa [#allocation4 + $0x1], 0  ;;  %s2240_s18 = smov 0   ;;  %s2242_s19 = smov 0  }
   0x9   :  { %s2244_s20 = smov 0   ;;  %s2246_s21 = smov 0  }
   0xa   :  { %s2248_s22 = smov 0   ;;  %s2250_s23 = smov 0  }
   0xb   :  { %s2252_s24 = smov 0   ;;  %s2254_s25 = smov 0  }
   0xc LB: > { %2618 = sst [smem:[#allocation6_spill]] %s2113_s18  ;;  %s1757_s26 = sadd.s32 4294967295, %s2141_s25   ;;  %s2141_s25 = sphi %s2254_s25, %s28_s25   ;;  %s2137_s24 = sphi %s2252_s24, %s2660_s24   ;;  %s2133_s23 = sphi %s2250_s23, %s2659_s23   ;;  %s2129_s22 = sphi %s2248_s22, %s2658_s22   ;;  %s2125_s21 = sphi %s2246_s21, %s2657_s21   ;;  %s2121_s20 = sphi %s2244_s20, %s2656_s20   ;;  %s2117_s19 = sphi %s2242_s19, %s2655_s19   ;;  %s2113_s18 = sphi %s2240_s18, %s2654_s18  }
   0xd   : > { %2619 = sst [smem:[#allocation7_spill]] %s2117_s19  ;;  %s1758_s27 = sadd.s32 4294967294, %s2141_s25  }
   0xe   : > { %2620 = sst [smem:[#allocation8_spill]] %s2121_s20  ;;  %s37_s28 = sadd.s32 1, %s2133_s23 }
   0xf   : > { %2621 = sst [smem:[#allocation9_spill]] %s2125_s21  ;;  %p38_p0 = scmp.ge.s32.totalorder %s37_s28, 2 }
  0x10   : > { %2622 = sst [smem:[#allocation10_spill]] %s2129_s22  ;;  %s40_s29 = sadd.s32 1, %s2137_s24 }
  0x11   : > { %2623 = sst [smem:[#allocation11_spill]] %s2133_s23  ;;  %p437_p1 = scmp.ne.s32.totalorder %s2121_s20, %s2117_s19 }
  0x12   : > { %2624 = sst [smem:[#allocation12_spill]] %s2137_s24  ;;  %p438_p2 = scmp.eq.s32.totalorder %s1757_s26, 3 }
  0x13   : > { %2625 = sst [smem:[#allocation13_spill]] %s2141_s25  ;;  %s2662_s28 = smov (%p38_p0, %s37_s28), 0 }
  0x14   : > { %2626 = sst [smem:[#allocation14_spill]] %s2662_s28  ;;  %s2664_s29 = smov (!%p38_p0, %s40_s29), %s2137_s24 }
  0x15   : > { %p2289_p3 = por %p438_p2, %p437_p1  ;;  %p443_p4 = scmp.ne.s32.totalorder %s2117_s19, %s2113_s18 }
  0x16   : > { %p42_p5 = scmp.ge.s32.totalorder %s2664_s29, 2  ;;  %p444_p6 = scmp.eq.s32.totalorder %s1758_s27, 3 }
  0x17   : > { %s2627_s30 = scalar_select %p2289_p3, 1, 0 }
  0x18   : > { %p1761_p7 = scmp.ge.s32.totalorder %s2141_s25, 1  ;;  %p555_p8 = scmp.lt.s32.totalorder %s2141_s25, 5 }
  0x19   : > { %2628 = sst [smem:[#allocation15_spill]] %s2627_s30  ;;  %s2666_s29 = smov (%p42_p5, %s2664_s29), 0 }
  0x1a   : > { %2629 = sst [smem:[#allocation16_spill]] %s2666_s29  ;;  %p2299_p9 = por %p444_p6, %p443_p4 }
  0x1b   : > { %p556_p10 = pnand %p1761_p7, %p555_p8  ;;  %s424_s17 = ssub.s32 %s2137_s24, %s2666_s29 }
  0x1c   : > { %s2630_s16 = scalar_select %p2299_p9, 1, 0 }
  0x1d   : > { %s427_s26 = sadd.s32 1, %s2121_s20  ;;  %p425_p11 = scmp.eq.s32.totalorder %s424_s17, 0 }
  0x1e   : > { %2631 = sst [smem:[#allocation17_spill]] %s2630_s16  ;;  %559 = sbr.rel (%p556_p10) target bundleno = 2835 (0xb13), region = 80 }
  0x1f   : > { %s2307_s28 = scalar_select %p425_p11, %s2121_s20, %s427_s26  }
  0x21   : > { %2632 = sst [smem:[#allocation18_spill]] %s2307_s28 }
  0x23   : > { %s2600_s27 = sand.u32 1, %s2117_s19   ;;  %p646_p12 = scmp.lt.s32.totalorder %s2129_s22, 1 }
  0x24   : > { %s2313_s23 = sshll.u32 %s2600_s27, 3  ;;  %p650_p13 = scmp.lt.s32.totalorder %s2125_s21, 1 }
  0x25   : > { %s647_s16 = scalar_select %p646_p12, %s2129_s22, 1 }
  0x26   : > { %s2318_s18 = scalar_select %p650_p13, %s2125_s21, 1 }
  0x27   : > { %s1763_s17 = sshll.u32 %s647_s16, 3  ;;  %s2633_s0 = sld [smem:[#allocation20_spill]] }
  0x28   : > { %s1810_s24 = sshll.u32 %s2318_s18, 4  ;;  %s2634_s3 = sld [smem:[#allocation23_spill]] }
  0x29   : > { %s2636_s5 = sld [smem:[#allocation24_spill]]  ;;  %s2353_s30 = scalar_lea.vmem %s2589_s9, %s1810_s24 }
  0x2a   : > { %s679_s19 = scalar_lea.vmem %s2590_s10, %s2318_s18  ;;  %s687_s29 = scalar_lea.vmem %s2592_s12, %s2318_s18 }
  0x2b   : > { %s645_s2 = scalar_lea.vmem [#allocation3], %s2313_s23  ;;  %s2637_s22 = sld [smem:[#allocation9_spill]] }
  0x2d   : > { %s649_s27 = scalar_lea.vmem %s2633_s0, %s1763_s17 }
  0x2e   : > { %s2327_s25 = scalar_lea.vmem %s2634_s3, %s1810_s24  ;;  %s693_s3 = scalar_lea.vmem %s2594_s14, %s2318_s18 }
  0x2f   : > { %2635 = sst [smem:[#allocation19_spill]] %s2327_s25  ;;  %s2336_s1 = scalar_lea.vmem %s2636_s5, %s1810_s24 }
  0x30   : > { %s1813_s5 = sshll.u32 %s2318_s18, 5  ;;  %s690_s25 = scalar_lea.vmem %s2593_s13, %s2318_s18 }
  0x31   : > { %s2367_s0 = scalar_lea.vmem %s2591_s11, %s1813_s5  ;;  %p1772_p0 = scmp.ne.s32.totalorder %s2637_s22, 0 }
  0x32   : > { %s2638_s16 = sld [smem:[#allocation21_spill]] (!%p1772_p0) }
  0x33   : > { %698 = sbr.rel (%p1772_p0) target bundleno = 366 (0x16e), region = 84  ;;  %s2639_s26 = sld [smem:[#allocation22_spill]] (!%p1772_p0) }
  0x38   : > { %v699_v0 = vld [vmem:[%s649_s27] sm:$0xff]  ;;  %vm702_vm0 = vcmask 261120  }
  0x39   : > { %v703_v1 = vsel %vm702_vm0, %v699_v0, 0.0  ;;  %v1773_v11 = vld [vmem:[%s2638_s16] ss:$0 sm:$0xff] }
  0x3a   : > { %704 = vadd.xlane.f32.xlu0 %v703_v1  ;;  %v1774_v13 = vld [vmem:[%s2639_s26] ss:$0 sm:$0xff] }
  0xc3   : > { %v705_v2 = vpop.xlane.xlu0 %704 }
  0xc4   : > { %v707_v3 = vmul.f32 0.03125, %v705_v2 }
  0xc6   : > { %v708_v4 = vsub.f32 %v699_v0, %v707_v3 }
  0xc8   : > { %v709_v5 = vmul.f32 %v708_v4, %v708_v4 }
  0xca   : > { %v710_v6 = vsel %vm702_vm0, %v709_v5, 0.0 }
  0xcb   : > { %711 = vadd.xlane.f32.xlu0 %v710_v6 }
 0x154   : > { %v712_v7 = vpop.xlane.xlu0 %711 }
 0x155   : > { %v713_v8 = vmul.f32 0.03125, %v712_v7 }
 0x157   : > { %v714_v9 = vadd.f32 1e-12, %v713_v8 }
 0x159   : > { %2015 = vrsqrt.f32 %v714_v9 }
 0x166   : > { %v2016_v10 = vpop.eup %2015 }
 0x167   : > { %v716_v12 = vmul.f32 %v2016_v10, %v708_v4 }
 0x169   : > { %v723_v14 = vmul.f32 %v1773_v11, %v716_v12 }
 0x16b   : > { %v730_v15 = vadd.f32 %v1774_v13, %v723_v14 }
 0x16d   : > { %731 = vst.msk [vmem:[#allocation2] sm:$0xff] %vm702_vm0, %v730_v15 }
 0x16e PF: > { %s2640_s20 = sld [smem:[#allocation19_spill]]  ;;  %v2143_v17 = vmov 0.0   ;;  %vm2144_vm1 = vmmov 0   ;;  %vm757_vm2 = vcmask 261120   ;;  %s2641_s15 = scalar_lea.vmem %s2584_s4, %s2318_s18  ;;  %vm807_vm3 = vcmask 64512  }
 0x16f   : > { %1844 = vmatprep.subr.bf16.mxu0 %v2143_v17  ;;  %1852 = vmatprep.subr.bf16.mxu1 %v2143_v17  ;;  %v1775_v21 = vld [vmem:[%s2641_s15] ss:$0 sm:$0xff]  ;;  %s2145_s22 = smov 96   ;;  %s2146_s5 = smov 120   ;;  %vm871_vm4 = vcmask 1043456   ;;  %vm1259_vm5 = vcmask 130048  }
 0x170   : > { %1848 = vmatprep.mubr.msk.bf16.mxu0 %vm2144_vm1, %v2143_v17  ;;  %1854 = vmatprep.mubr.msk.bf16.mxu1 %vm2144_vm1, %v2143_v17  ;;  %s2147_s21 = smov 88   ;;  %s2148_s16 = smov 80   ;;  %vm1261_vm6 = vcmask 195584   ;;  %vm1473_vm7 = vcmask 523264  }
 0x171   : > { %s2149_s27 = smov 112   ;;  %s2150_s17 = smov 72  }
 0x172   : > { %s2151_s26 = smov 104   ;;  %s2153_s28 = smov 64  }
 0x173   : > { %s2154_s24 = smov 40   ;;  %s2155_s15 = smov 48  }
 0x174   : > { %v2017_v16 = vld [vmem:[%s2640_s20 + $0x8] sm:$0xff]   ;;  %v2018_v18 = vld [vmem:[%s2640_s20] sm:$0xff]   ;;  %s2152_s20 = smov 56  }
 0x175   : > { %1845 = vmatpush3.bf16.msra.mxu0 %v2017_v16  ;;  %v2394_v19 = vld [vmem:[#allocation2] sm:$0xff] }
 0x176   : > { %1846 = vmatprep.subr.bf16.mxu0 %v2143_v17  ;;  %v733_v20 = vpack.c.bf16 %v2394_v19, %v2394_v19 }
 0x179   : > { %1847 = vmatpush3.bf16.msra.mxu0 %v2018_v18 }
 0x17a   : > { %1858 = vmatprep.subr.bf16.mxu0 %v2143_v17 }
 0x17c   : > { %1849 = vmatmul.mubr.msk.bf16.vlgmr.msra.gmra.mxu0 %vm757_vm2, %v733_v20 }
 0x17d   : > { %1860 = vmatprep.mubr.msk.bf16.mxu0 %vm2144_vm1, %v2143_v17 }
 0x23c   : > { %v795_v22 = vpop.f32.mrf.mxu0 }
 0x23d   : > { %v796_v23 = vadd.f32 %v1775_v21, %v795_v22 }
 0x23e   : > { %v1850_v24 = vpop.f32.mrf.mxu0 }
 0x23f   : > { %v801_v25 = vmul.f32 0.35355338, %v796_v23  ;;  %v2410_v26 = vpack.c.bf16 %v796_v23, %v796_v23 }
 0x240   : > { %v798_v27 = vpop.f32.mrf.mxu0 }
 0x241   : > { %v802_v28 = vpack.c.bf16 %v801_v25, %v801_v25  ;;  %805 = vrot.lane.b32.xlu0 %v2410_v26, %s2145_s22  ;;  %s2156_s22 = smov 8  }
 0x242   : > { %v1851_v29 = vpop.f32.mrf.mxu0 }
 0x243   : > { %916 = vrot.lane.b32.xlu1 %v802_v28, %s2146_s5  ;;  %s2157_s5 = smov 16  }
 0x245   : > { %918 = vrot.lane.b32.xlu0 %v2410_v26, %s2147_s21  ;;  %s2158_s21 = smov 24  }
 0x247   : > { %1028 = vrot.lane.b32.xlu1 %v2410_v26, %s2148_s16  ;;  %s2645_s16 = sld [smem:[#allocation9_spill]] }
 0x249   : > { %1026 = vrot.lane.b32.xlu0 %v802_v28, %s2149_s27  ;;  %s2642_s27 = scalar_lea.vmem %s2586_s6, %s2318_s18 }
 0x24b   : > { %1138 = vrot.lane.b32.xlu1 %v2410_v26, %s2150_s17 }
 0x24d   : > { %1136 = vrot.lane.b32.xlu0 %v802_v28, %s2151_s26  ;;  %p1805_p1 = scmp.ne.s32.totalorder %s2645_s16, 1 }
 0x2b3   : > { %v806_v30 = vpop.permute.xlu0 %805 }
 0x2b4   : > { %v812_v31 = vsel %vm807_vm3, %v806_v30, 0 }
 0x2b5   : > { %1853 = vmatpush3.bf16.xpose.msra.mxu1 %v812_v31  ;;  %v917_v33 = vpop.permute.xlu1 %916 }
 0x2b6   : > { %1864 = vmatprep.subr.bf16.mxu1 %v2143_v17 }
 0x2b7   : > { %v919_v32 = vpop.permute.xlu0 %918 }
 0x2b8   : > { %v924_v34 = vsel %vm807_vm3, %v919_v32, 0 }
 0x2b9   : > { %v1029_v35 = vpop.permute.xlu1 %1028 }
 0x2ba   : > { %v1034_v36 = vsel %vm807_vm3, %v1029_v35, 0 }
 0x2bb   : > { %v1027_v38 = vpop.permute.xlu0 %1026 }
 0x2bc   : > { %1855 = vmatmul.mubr.msk.bf16.vlgmr.msra.gmra.mxu1 %vm807_vm3, %v802_v28 }
 0x2bd   : > { %1865 = vmatpush3.bf16.xpose.msra.mxu1 %v924_v34  ;;  %1866 = vmatprep.mubr.msk.bf16.mxu1 %vm2144_vm1, %v2143_v17  ;;  %v1139_v37 = vpop.permute.xlu1 %1138 }
 0x2be   : > { %1876 = vmatprep.subr.bf16.mxu1 %v2143_v17  ;;  %v1144_v39 = vsel %vm807_vm3, %v1139_v37, 0 }
 0x2bf   : > { %v1137_v40 = vpop.permute.xlu0 %1136 }
 0x2c4   : > { %1867 = vmatmul.mubr.msk.bf16.vlgmr.msra.gmra.mxu1 %vm807_vm3, %v917_v33 }
 0x2c5   : > { %1877 = vmatpush3.bf16.xpose.msra.mxu1 %v1034_v36  ;;  %1878 = vmatprep.mubr.msk.bf16.mxu1 %vm2144_vm1, %v2143_v17 }
 0x2c6   : > { %1888 = vmatprep.subr.bf16.mxu1 %v2143_v17 }
 0x2cc   : > { %1879 = vmatmul.mubr.msk.bf16.vlgmr.msra.gmra.mxu1 %vm807_vm3, %v1027_v38 }
 0x2cd   : > { %1889 = vmatpush3.bf16.xpose.msra.mxu1 %v1144_v39  ;;  %1890 = vmatprep.mubr.msk.bf16.mxu1 %vm2144_vm1, %v2143_v17 }
 0x2ce   : > { %1900 = vmatprep.subr.bf16.mxu1 %v2143_v17 }
 0x2d4   : > { %1891 = vmatmul.mubr.msk.bf16.vlgmr.msra.gmra.mxu1 %vm807_vm3, %v1137_v40 }
 0x2d5   : > { %1904 = vmatprep.mubr.msk.bf16.mxu1 %vm2144_vm1, %v2143_v17 }
 0x37c   : > { %v848_v41 = vpop.f32.mrf.mxu1 }
 0x37d   : > { %v854_v42 = vsel %vm807_vm3, %v848_v41, -inf }
 0x37e   : > { %855 = vmax.xlane.f32.xlu1 %v854_v42  ;;  %v1856_v43 = vpop.f32.mrf.mxu1 }
 0x380   : > { %v851_v44 = vpop.f32.mrf.mxu1 }
 0x382   : > { %v1857_v45 = vpop.f32.mrf.mxu1 }
 0x384   : > { %v960_v46 = vpop.f32.mrf.mxu1 }
 0x385   : > { %v966_v47 = vsel %vm807_vm3, %v960_v46, -inf }
 0x386   : > { %967 = vmax.xlane.f32.xlu0 %v966_v47  ;;  %v1868_v48 = vpop.f32.mrf.mxu1 }
 0x388   : > { %v963_v49 = vpop.f32.mrf.mxu1 }
 0x38a   : > { %v1869_v50 = vpop.f32.mrf.mxu1 }
 0x38c   : > { %v1070_v51 = vpop.f32.mrf.mxu1 }
 0x38d   : > { %v1076_v52 = vsel %vm807_vm3, %v1070_v51, -inf }
 0x38e   : > { %1077 = vmax.xlane.f32.xlu0 %v1076_v52  ;;  %v1880_v53 = vpop.f32.mrf.mxu1  ;;  %v2020_v52 = vld [vmem:[%s2336_s1] sm:$0xff]  }
 0x390   : > { %v1073_v54 = vpop.f32.mrf.mxu1 }
 0x392   : > { %v1881_v55 = vpop.f32.mrf.mxu1 }
 0x394   : > { %v1180_v56 = vpop.f32.mrf.mxu1 }
 0x395   : > { %v1186_v57 = vsel %vm807_vm3, %v1180_v56, -inf }
 0x396   : > { %1187 = vmax.xlane.f32.xlu1 %v1186_v57  ;;  %v1892_v58 = vpop.f32.mrf.mxu1 }
 0x398   : > { %v1183_v59 = vpop.f32.mrf.mxu1 }
 0x39a   : > { %v1893_v60 = vpop.f32.mrf.mxu1 }
 0x407   : > { %v856_v61 = vpop.xlane.xlu1 %855 }
 0x408   : > { %v857_v62 = vsub.f32 %v848_v41, %v856_v61 }
 0x40a   : > { %v858_v63 = vmul.f32 1.442695, %v857_v62 }
 0x40c   : > { %2027 = vpow2.f32 %v858_v63 }
 0x40f   : > { %v968_v0 = vpop.xlane.xlu0 %967 }
 0x410   : > { %v969_v1 = vsub.f32 %v960_v46, %v968_v0 }
 0x412   : > { %v970_v2 = vmul.f32 1.442695, %v969_v1 }
 0x414   : > { %2029 = vpow2.f32 %v970_v2 }
 0x417   : > { %v1078_v3 = vpop.xlane.xlu0 %1077 }
 0x418   : > { %v1079_v4 = vsub.f32 %v1070_v51, %v1078_v3  ;;  %v2019_v51 = vld [vmem:[%s2336_s1 + $0x8] sm:$0xff]  }
 0x419   : > { %v2028_v5 = vpop.eup %2027  ;;  %1901 = vmatpush3.bf16.msra.mxu1 %v2019_v51 }
 0x41a   : > { %v1080_v6 = vmul.f32 1.442695, %v1079_v4  ;;  %v860_v7 = vsel %vm807_vm3, %v2028_v5, 0.0  ;;  %1902 = vmatprep.subr.bf16.mxu1 %v2143_v17  ;;  %v1787_v4 = vld [vmem:[%s2642_s27] ss:$0 sm:$0xff] }
 0x41b   : > { %861 = vadd.xlane.f32.xlu0 %v860_v7 }
 0x41c   : > { %2031 = vpow2.f32 %v1080_v6 }
 0x41d   : > { %1903 = vmatpush3.bf16.msra.mxu1 %v2020_v52 }
 0x41e   : > { %1916 = vmatprep.subr.bf16.mxu1 %v2143_v17 }
 0x41f   : > { %v1188_v12 = vpop.xlane.xlu1 %1187 }
 0x420   : > { %v1189_v13 = vsub.f32 %v1180_v56, %v1188_v12 }
 0x421   : > { %v2030_v8 = vpop.eup %2029 }
 0x422   : > { %v972_v9 = vsel %vm807_vm3, %v2030_v8, 0.0  ;;  %v1190_v14 = vmul.f32 1.442695, %v1189_v13 }
 0x423   : > { %973 = vadd.xlane.f32.xlu1 %v972_v9 }
 0x424   : > { %2033 = vpow2.f32 %v1190_v14 }
 0x429   : > { %v2032_v10 = vpop.eup %2031 }
 0x42a   : > { %v1082_v11 = vsel %vm807_vm3, %v2032_v10, 0.0 }
 0x42b   : > { %1083 = vadd.xlane.f32.xlu0 %v1082_v11 }
 0x431   : > { %v2034_v15 = vpop.eup %2033 }
 0x432   : > { %v1192_v16 = vsel %vm807_vm3, %v2034_v15, 0.0 }
 0x434   : > { %978 = vrot.lane.b32.xlu1 %v2410_v26, %s2152_s20  ;;  %s2643_s20 = scalar_lea.vmem %s2587_s7, %s2318_s18 }
 0x441   : > { %866 = vrot.lane.b32.xlu0 %v2410_v26, %s2153_s28 }
 0x445   : > { %1198 = vrot.lane.b32.xlu0 %v2410_v26, %s2154_s24 }
 0x458   : > { %1193 = vadd.xlane.f32.xlu1 %v1192_v16 }
 0x469   : > { %1088 = vrot.lane.b32.xlu1 %v2410_v26, %s2155_s15 }
 0x4a4   : > { %v862_v18 = vpop.xlane.xlu0 %861 }
 0x4a5   : > { %2035 = vrcp.f32 %v862_v18  ;;  %v2021_v18 = vld [vmem:[%s2353_s30 + $0x8] sm:$0xff]  }
 0x4ac   : > { %v974_v20 = vpop.xlane.xlu1 %973 }
 0x4ad   : > { %2037 = vrcp.f32 %v974_v20  ;;  %v2022_v20 = vld [vmem:[%s2353_s30] sm:$0xff]   ;;  %s2644_s30 = scalar_lea.vmem %s2588_s8, %s2318_s18 }
 0x4b0   : > { %v979_v27 = vpop.permute.xlu1 %978 }
 0x4b1   : > { %v984_v30 = vsel %vm871_vm4, %v979_v27, 0  ;;  %v1792_v27 = vld [vmem:[%s2644_s30] ss:$0 sm:$0xff] }
 0x4b2   : > { %v2036_v21 = vpop.eup %2035 }
 0x4b3   : > { %v864_v23 = vmul.f32 %v2036_v21, %v2028_v5 }
 0x4b4   : > { %v1084_v22 = vpop.xlane.xlu0 %1083 }
 0x4b5   : > { %v865_v28 = vpack.c.bf16 %v864_v23, %v864_v23  ;;  %2039 = vrcp.f32 %v1084_v22 }
 0x4b8   : > { %v867_v24 = vpop.permute.xlu0 %866 }
 0x4b9   : > { %v873_v25 = vsel %vm871_vm4, %v867_v24, 0  ;;  %v1791_v24 = vld [vmem:[%s2643_s20] ss:$0 sm:$0xff] }
 0x4ba   : > { %1859 = vmatpush3.bf16.msra.mxu0 %v873_v25  ;;  %v2038_v29 = vpop.eup %2037 }
 0x4bb   : > { %1870 = vmatprep.subr.bf16.mxu0 %v2143_v17  ;;  %v976_v26 = vmul.f32 %v2038_v29, %v2030_v8 }
 0x4bc   : > { %v1199_v37 = vpop.permute.xlu0 %1198 }
 0x4bd   : > { %1861 = vmatmul.mubr.msk.bf16.vlgmr.msra.gmra.mxu0 %vm807_vm3, %v865_v28  ;;  %v977_v31 = vpack.c.bf16 %v976_v26, %v976_v26  ;;  %v1204_v39 = vsel %vm871_vm4, %v1199_v37, 0  ;;  %v2023_v26 = vld [vmem:[%s2367_s0 + $0x18] sm:$0xff]  }
 0x4be   : > { %1871 = vmatpush3.bf16.msra.mxu0 %v984_v30  ;;  %1872 = vmatprep.mubr.msk.bf16.mxu0 %vm2144_vm1, %v2143_v17 }
 0x4bf   : > { %1882 = vmatprep.subr.bf16.mxu0 %v2143_v17 }
 0x4c2   : > { %v2040_v32 = vpop.eup %2039 }
 0x4c3   : > { %v1086_v34 = vmul.f32 %v2040_v32, %v2032_v10  ;;  %v2025_v32 = vld [vmem:[%s2367_s0 + $0x8] sm:$0xff]  }
 0x4c5   : > { %1873 = vmatmul.mubr.msk.bf16.vlgmr.msra.gmra.mxu0 %vm807_vm3, %v977_v31  ;;  %v1087_v38 = vpack.c.bf16 %v1086_v34, %v1086_v34  ;;  %v2024_v31 = vld [vmem:[%s2367_s0 + $0x10] sm:$0xff]   ;;  %v1793_v34 = vld [vmem:[%s679_s19] ss:$0 sm:$0xff] }
 0x4c6   : > { %1884 = vmatprep.mubr.msk.bf16.mxu0 %vm2144_vm1, %v2143_v17 }
 0x4e1   : > { %v1194_v33 = vpop.xlane.xlu1 %1193 }
 0x4e2   : > { %2041 = vrcp.f32 %v1194_v33  ;;  %v2026_v33 = vld [vmem:[%s2367_s0] sm:$0xff]  }
 0x4e5   : > { %v1089_v35 = vpop.permute.xlu1 %1088 }
 0x4e6   : > { %v1094_v36 = vsel %vm871_vm4, %v1089_v35, 0 }
 0x4e7   : > { %1883 = vmatpush3.bf16.msra.mxu0 %v1094_v36 }
 0x4e8   : > { %1894 = vmatprep.subr.bf16.mxu0 %v2143_v17 }
 0x4ea   : > { %1885 = vmatmul.mubr.msk.bf16.vlgmr.msra.gmra.mxu0 %vm807_vm3, %v1087_v38 }
 0x4eb   : > { %1895 = vmatpush3.bf16.msra.mxu0 %v1204_v39  ;;  %1896 = vmatprep.mubr.msk.bf16.mxu0 %vm2144_vm1, %v2143_v17 }
 0x4ec   : > { %1908 = vmatprep.subr.bf16.mxu0 %v2143_v17 }
 0x4ef   : > { %v2042_v40 = vpop.eup %2041 }
 0x4f0   : > { %v1196_v41 = vmul.f32 %v2042_v40, %v2034_v15 }
 0x4f2   : > { %v1197_v42 = vpack.c.bf16 %v1196_v41, %v1196_v41 }
 0x4f4   : > { %1897 = vmatmul.mubr.msk.bf16.vlgmr.msra.gmra.mxu0 %vm807_vm3, %v1197_v42 }
 0x4f5   : > { %1912 = vmatprep.mubr.msk.bf16.mxu0 %vm2144_vm1, %v2143_v17  ;;  %1909 = vmatpush3.bf16.msra.mxu0 %v2021_v18 }
 0x4f6   : > { %1910 = vmatprep.subr.bf16.mxu0 %v2143_v17 }
 0x4f9   : > { %1911 = vmatpush3.bf16.msra.mxu0 %v2022_v20 }
 0x57d   : > { %v909_v43 = vpop.f32.mrf.mxu0 }
 0x57f   : > { %v1862_v44 = vpop.f32.mrf.mxu0 }
 0x581   : > { %v912_v45 = vpop.f32.mrf.mxu0 }
 0x582   : > { %v1797_v45 = vld [vmem:[%s687_s29] ss:$0 sm:$0xff] }
 0x583   : > { %v1863_v46 = vpop.f32.mrf.mxu0 }
 0x585   : > { %v1020_v47 = vpop.f32.mrf.mxu0 }
 0x586   : > { %1247 = vrot.lane.b32.xlu1 %v1020_v47, %s2156_s22 }
 0x587   : > { %v1874_v48 = vpop.f32.mrf.mxu0 }
 0x589   : > { %v1023_v49 = vpop.f32.mrf.mxu0 }
 0x58b   : > { %v1875_v50 = vpop.f32.mrf.mxu0 }
 0x5aa   : > { %v1130_v53 = vpop.f32.mrf.mxu0 }
 0x5ab   : > { %1251 = vrot.lane.b32.xlu0 %v1130_v53, %s2157_s5 }
 0x5ac   : > { %v1886_v54 = vpop.f32.mrf.mxu0 }
 0x5ae   : > { %v1133_v55 = vpop.f32.mrf.mxu0 }
 0x5b0   : > { %v1887_v56 = vpop.f32.mrf.mxu0 }
 0x5b4   : > { %v1240_v57 = vpop.f32.mrf.mxu0 }
 0x5b5   : > { %1255 = vrot.lane.b32.xlu1 %v1240_v57, %s2158_s21 }
 0x5b6   : > { %v1898_v58 = vpop.f32.mrf.mxu0 }
 0x5b8   : > { %v1243_v59 = vpop.f32.mrf.mxu0 }
 0x5ba   : > { %v1899_v60 = vpop.f32.mrf.mxu0 }
 0x5f8   : > { %v1248_v61 = vpop.permute.xlu1 %1247 }
 0x5f9   : > { %v1258_v63 = vsel %vm807_vm3, %v909_v43, %v1248_v61 }
 0x61d   : > { %v1252_v62 = vpop.permute.xlu0 %1251 }
 0x61e   : > { %v1260_v0 = vsel %vm1259_vm5, %v1258_v63, %v1252_v62  ;;  %v1803_v62 = vld [vmem:[%s690_s25] ss:$0 sm:$0xff] }
 0x627   : > { %v1256_v1 = vpop.permute.xlu1 %1255 }
 0x628   : > { %v1262_v2 = vsel %vm1261_vm6, %v1260_v0, %v1256_v1  ;;  %v1804_v0 = vld [vmem:[%s693_s3] ss:$0 sm:$0xff] }
 0x629   : > { %v1263_v3 = vpack.c.bf16 %v1262_v2, %v1262_v2 }
 0x62b   : > { %1905 = vmatmul.mubr.msk.bf16.vlgmr.msra.gmra.mxu1 %vm757_vm2, %v1263_v3 }
 0x62c   : > { %1924 = vmatprep.mubr.msk.bf16.mxu1 %vm2144_vm1, %v2143_v17  ;;  %1917 = vmatpush3.bf16.msra.mxu1 %v2023_v26 }
 0x62d   : > { %1918 = vmatprep.subr.bf16.mxu1 %v2143_v17 }
 0x630   : > { %1919 = vmatpush3.bf16.msra.mxu1 %v2024_v31 }
 0x631   : > { %1920 = vmatprep.subr.bf16.mxu1 %v2143_v17 }
 0x634   : > { %1921 = vmatpush3.bf16.msra.mxu1 %v2025_v32 }
 0x635   : > { %1922 = vmatprep.subr.bf16.mxu1 %v2143_v17 }
 0x638   : > { %1923 = vmatpush3.bf16.msra.mxu1 %v2026_v33 }
 0x6eb   : > { %v1324_v5 = vpop.f32.mrf.mxu1 }
 0x6ec   : > { %v1325_v6 = vadd.f32 %v1787_v4, %v1324_v5 }
 0x6ed   : > { %v1906_v7 = vpop.f32.mrf.mxu1 }
 0x6ee   : > { %v1330_v8 = vadd.f32 %v1325_v6, %v2394_v19 }
 0x6ef   : > { %v1327_v9 = vpop.f32.mrf.mxu1 }
 0x6f0   : > { %v1333_v10 = vsel %vm757_vm2, %v1330_v8, 0.0 }
 0x6f1   : > { %1334 = vadd.xlane.f32.xlu0 %v1333_v10  ;;  %v1907_v11 = vpop.f32.mrf.mxu1 }
 0x77a   : > { %v1335_v12 = vpop.xlane.xlu0 %1334 }
 0x77b   : > { %v1337_v13 = vmul.f32 0.03125, %v1335_v12 }
 0x77d   : > { %v1338_v14 = vsub.f32 %v1330_v8, %v1337_v13 }
 0x77f   : > { %v1339_v15 = vmul.f32 %v1338_v14, %v1338_v14 }
 0x781   : > { %v1340_v16 = vsel %vm757_vm2, %v1339_v15, 0.0 }
 0x782   : > { %1341 = vadd.xlane.f32.xlu1 %v1340_v16 }
 0x80b   : > { %v1342_v19 = vpop.xlane.xlu1 %1341 }
 0x80c   : > { %v1343_v21 = vmul.f32 0.03125, %v1342_v19 }
 0x80e   : > { %v1344_v22 = vadd.f32 1e-12, %v1343_v21 }
 0x810   : > { %2043 = vrsqrt.f32 %v1344_v22 }
 0x81d   : > { %v2044_v23 = vpop.eup %2043 }
 0x81e   : > { %v1346_v25 = vmul.f32 %v2044_v23, %v1338_v14 }
 0x820   : > { %v1353_v28 = vmul.f32 %v1791_v24, %v1346_v25 }
 0x822   : > { %v1360_v29 = vadd.f32 %v1792_v27, %v1353_v28 }
 0x824   : > { %v1361_v30 = vpack.c.bf16 %v1360_v29, %v1360_v29 }
 0x826   : > { %1913 = vmatmul.mubr.msk.bf16.vlgmr.msra.gmra.mxu0 %vm757_vm2, %v1361_v30 }
 0x8e6   : > { %v1422_v35 = vpop.f32.mrf.mxu0 }
 0x8e7   : > { %v1423_v36 = vadd.f32 %v1793_v34, %v1422_v35 }
 0x8e8   : > { %v1914_v37 = vpop.f32.mrf.mxu0 }
 0x8e9   : > { %v1429_v38 = vmul.f32 0.70710677, %v1423_v36  ;;  %v1428_v42 = vmul.f32 0.5, %v1423_v36 }
 0x8ea   : > { %v1425_v39 = vpop.f32.mrf.mxu0 }
 0x8eb   : > { %2045 = verf.f32 %v1429_v38 }
 0x8ec   : > { %v1915_v40 = vpop.f32.mrf.mxu0 }
 0x8f8   : > { %v2046_v41 = vpop.eup %2045 }
 0x8f9   : > { %v1431_v43 = vadd.f32 1.0, %v2046_v41 }
 0x8fb   : > { %v1432_v44 = vmul.f32 %v1431_v43, %v1428_v42 }
 0x8fd   : > { %v1433_v17 = vpack.c.bf16 %v1432_v44, %v1432_v44 }
 0x8ff   : > { %1925 = vmatmul.mubr.msk.bf16.vlgmr.msra.gmra.mxu1 %vm1473_vm7, %v1433_v17 }
 0x9bf   : > { %v1511_v46 = vpop.f32.mrf.mxu1 }
 0x9c0   : > { %v1512_v47 = vadd.f32 %v1797_v45, %v1511_v46 }
 0x9c1   : > { %v1926_v48 = vpop.f32.mrf.mxu1 }
 0x9c2   : > { %v1517_v49 = vadd.f32 %v1512_v47, %v1360_v29 }
 0x9c3   : > { %v1514_v50 = vpop.f32.mrf.mxu1 }
 0x9c4   : > { %v1520_v51 = vsel %vm757_vm2, %v1517_v49, 0.0 }
 0x9c5   : > { %1521 = vadd.xlane.f32.xlu0 %v1520_v51  ;;  %v1927_v52 = vpop.f32.mrf.mxu1 }
 0xa4e   : > { %v1522_v53 = vpop.xlane.xlu0 %1521 }
 0xa4f   : > { %v1523_v54 = vmul.f32 0.03125, %v1522_v53 }
 0xa51   : > { %v1524_v55 = vsub.f32 %v1517_v49, %v1523_v54 }
 0xa53   : > { %v1525_v56 = vmul.f32 %v1524_v55, %v1524_v55 }
 0xa55   : > { %v1526_v57 = vsel %vm757_vm2, %v1525_v56, 0.0 }
 0xa56   : > { %1527 = vadd.xlane.f32.xlu0 %v1526_v57 }
 0xadf   : > { %v1528_v58 = vpop.xlane.xlu0 %1527 }
 0xae0   : > { %v1529_v59 = vmul.f32 0.03125, %v1528_v58 }
 0xae2   : > { %v1530_v60 = vadd.f32 1e-12, %v1529_v59 }
 0xae4   : > { %2047 = vrsqrt.f32 %v1530_v60 }
 0xaf1   : > { %v2048_v61 = vpop.eup %2047 }
 0xaf2   : > { %v1532_v63 = vmul.f32 %v2048_v61, %v1524_v55 }
 0xaf4   : > { %v1539_v1 = vmul.f32 %v1803_v62, %v1532_v63  ;;  %1551 = sbr.rel (%p1805_p1) target bundleno = 2810 (0xafa), region = 88 }
 0xaf6   : > { %v1546_v2 = vadd.f32 %v1804_v0, %v1539_v1 }
 0xaf8   : > { %1547 = vst.msk [vmem:[#allocation2] sm:$0xff] %vm757_vm2, %v1546_v2 }
 0xaf9   : > { %1552 = vst.msk [vmem:[%s645_s2] sm:$0xff] %vm757_vm2, %v1546_v2 }
 0xafa PF: > { %s2646_s27 = sld [smem:[#allocation10_spill]]  ;;  %s1567_s24 = sshll.u32 %s645_s2, 4  ;;  %s1568_s24 = int_to_ptr.vmem [resolvable:$true] %s1567_s24 }
 0xafb   : > { %s2647_s25 = sld [smem:[#allocation7_spill]]  ;;  %s2049_s22 = scalar_lea.vmem %s1568_s24, 128 }
 0xafc   : > { %s2649_s3 = sld [smem:[#allocation25_spill]]  ;;  %p2050_p2 = scmp.ne.s32.totalorder %s1568_s24, %s2049_s22 }
 0xafd   : > { %s2159_s0 = smov [#allocation3]  }
 0xafe   : > { %p2051_p4 = pnand %p2050_p2, %p2289_p3  ;;  %s2053_s5 = sshll.u32 %s2159_s0, 4  ;;  %s2054_s5 = int_to_ptr.vmem [resolvable:$false] %s2053_s5 }
 0xaff   : > { %s2055_s19 = scalar_lea.vmem %s2054_s5, 256  ;;  %p2056_p6 = scmp.lt.s32.totalorder %s1568_s24, %s2054_s5 }
 0xb00   : > { %s1807_s26 = sshll.u32 %s2646_s27, 7  ;;  %p2052_p5 = pneg %p2051_p4 }
 0xb01   : > { %s2650_s30 = sand.u32 1, %s2647_s25   ;;  %p2057_p7 = scmp.lt.s32.totalorder %s2055_s19, %s2049_s22 }
 0xb02   : > { %s1565_s28 = scalar_lea.hbm %s2649_s3, %s1807_s26  ;;  %s1554_s15 = scalar_lea.sflag [#allocation4], %s2650_s30 }
 0xb03   : > { %p2058_p8 = por %p2057_p7, %p2056_p6 }
 0xb05   : > { %p2059_p10 = pnand %p2058_p8, %p2052_p5 }
 0xb07   : > { %2062 = shalt.err (!%p2059_p10)
}
 0xb08   : > { %s2063_s29 = scalar_lea.hbm %s1565_s28, 128  ;;  %s2067_s21 = scalar_lea.hbm %s2649_s3, 256 }
 0xb09   : > { %p2064_p11 = scmp.ne.s32.totalorder %s1565_s28, %s2063_s29  ;;  %p2068_p0 = scmp.lt.s32.totalorder %s1565_s28, %s2649_s3 }
 0xb0a   : > { %p2069_p1 = scmp.lt.s32.totalorder %s2067_s21, %s2063_s29 }
 0xb0b   : > { %p2065_p12 = pnand %p2064_p11, %p2289_p3 }
 0xb0c   : > { %p2070_p2 = por %p2069_p1, %p2068_p0 }
 0xb0d   : > { %p2066_p13 = pneg %p2065_p12 }
 0xb0f   : > { %p2071_p4 = pnand %p2070_p2, %p2066_p13 }
 0xb11   : > { %2074 = shalt.err (!%p2071_p4)
}
 0xb12   : > { %1928 = dma.vmem_to_hbm [thread:$0]  (%p2289_p3), %s1568_s24, 128, %s1565_s28, %s1554_s15  }
 0xb13 PF: > { %s2651_s27 = sld [smem:[#allocation13_spill]] }
 0xb14   : > { %s2652_s25 = sld [smem:[#allocation6_spill]] }
 0xb19   : > { %p1934_p5 = scmp.ge.s32.totalorder %s2651_s27, 2 }
 0xb1a   : > { %s1579_s20 = sand.u32 1, %s2652_s25  }
 0xb1b   : > { %p1931_p6 = pnand %p1934_p5, %p2299_p9  ;;  %s1580_s18 = scalar_lea.sflag [#allocation4], %s1579_s20 }
 0xb1d   : > { %p1932_p7 = pneg %p1931_p6 }
 0xb1f   : > { %2108 = dma.done.wait (%p1932_p7), %s1580_s18, 128  }
 0xb20   : > { %2110 = vsyncadd (%p1932_p7), %s1580_s18, 4294967168  ;;  %s28_s25 = sadd.s32 1, %s2651_s27   ;;  %s2654_s18 = sld [smem:[#allocation7_spill]] }
 0xb21   : > { %p25_p8 = scmp.ge.s32.totalorder %s28_s25, 6   ;;  %s2655_s19 = sld [smem:[#allocation8_spill]] }
 0xb22   : > { %s2656_s20 = sld [smem:[#allocation18_spill]] }
 0xb23   : > { %s2657_s21 = sld [smem:[#allocation11_spill]]  ;;  %27 = sbr.rel (!%p25_p8) target bundleno = 12 (0xc), region = 159 }
 0xb24   : > { %s2658_s22 = sld [smem:[#allocation12_spill]] }
 0xb25   : > { %s2659_s23 = sld [smem:[#allocation14_spill]] }
 0xb26   : > { %s2660_s24 = sld [smem:[#allocation16_spill]] }
 0xb28   :  { %1585 = vsyncpa [#allocation4], 1 }
 0xb29   :  { %1587 = vsyncpa [#allocation4 + $0x1], 1 }

</bundles_post_ra>
